<compile_context>
chip_gen: v7x
topology: tpu7x:2x2x1
jax: 0.10.0
libtpu: 0.0.40
codegen_flags: <defaults>
</compile_context>

<pallas_src>
import math

import numpy as np
import jax
import jax.numpy as jnp
from jax.experimental import pallas as pl
from jax.experimental.pallas import tpu as pltpu


# ---------------------------------------------------------------------------
# Kernels
# ---------------------------------------------------------------------------

def _gcn_lap_x_then_w_kernel(lap_ref, x_ref, w_ref, b_ref, o_ref, acc_ref):
    """out = (lap @ x) @ W + b   (used when Fin <= Fout).

    lap_ref: (TM, TK)   x_ref: (TK, Fin)   w_ref: (Fin, Fout_pad)
    b_ref:   (1, Fout_pad)   o_ref: (TM, Fout_pad)   acc_ref: (TM, Fin) f32
    """
    k = pl.program_id(2)

    @pl.when(k == 0)
    def _():
        acc_ref[...] = jnp.zeros_like(acc_ref)

    acc_ref[...] += jnp.dot(lap_ref[...], x_ref[...],
                            preferred_element_type=jnp.float32)

    @pl.when(k == pl.num_programs(2) - 1)
    def _():
        out = jnp.dot(acc_ref[...], w_ref[...].astype(jnp.float32),
                      preferred_element_type=jnp.float32)
        o_ref[...] = (out + b_ref[...]).astype(o_ref.dtype)


def _gcn_lap_support_kernel(lap_ref, s_ref, b_ref, o_ref, acc_ref):
    """out = lap @ support + b   (used when Fin > Fout, support precomputed).

    lap_ref: (TM, TK)   s_ref: (TK, Fout_pad)   b_ref: (1, Fout_pad)
    o_ref:   (TM, Fout_pad)   acc_ref: (TM, Fout_pad) f32
    """
    k = pl.program_id(2)

    @pl.when(k == 0)
    def _():
        acc_ref[...] = jnp.zeros_like(acc_ref)

    acc_ref[...] += jnp.dot(lap_ref[...], s_ref[...],
                            preferred_element_type=jnp.float32)

    @pl.when(k == pl.num_programs(2) - 1)
    def _():
        o_ref[...] = (acc_ref[...] + b_ref[...]).astype(o_ref.dtype)


def _support_kernel(x_ref, w_ref, s_ref):
    """support = x @ W   (hoisted prologue for the Fin > Fout path)."""
    s_ref[...] = jnp.dot(x_ref[...], w_ref[...],
                         preferred_element_type=jnp.float32).astype(s_ref.dtype)


# ---------------------------------------------------------------------------
# Wrapper
# ---------------------------------------------------------------------------

def _round_up(x, m):
    return (x + m - 1) // m * m


def _pick_tile(n_pad):
    # n_pad is a multiple of 128; pick the biggest tile <= 512 that divides it
    # (512-wide tiles reach ~85% of HBM roofline; footprint stays far below the
    #  32 MiB scoped VMEM limit on all of v5e/v6e/v7x).
    for t in (512, 256, 128):
        if n_pad % t == 0:
            return t
    return n_pad


def graph_convolution(x, lap, weight, bias, *, compute_dtype=None):
    """Pallas GCN forward: lap @ (x @ W) + b (torch GraphConvolution.forward).

    compute_dtype: optional dtype (e.g. jnp.bfloat16 on v6e/v7x) for the
    streamed operands; accumulation is always f32.
    """
    B, N, Fin = x.shape
    Fout = weight.shape[1]
    out_dtype = x.dtype
    cdt = x.dtype if compute_dtype is None else compute_dtype

    N_pad = _round_up(N, 128)
    Fout_pad = _round_up(Fout, 128)
    TM = TK = _pick_tile(N_pad)

    # Cast + zero-pad to tile-friendly shapes (padding sliced off at the end;
    # zero rows/cols contribute nothing to the matmuls).
    x_p = jnp.pad(x.astype(cdt), ((0, 0), (0, N_pad - N), (0, 0)))
    lap_p = jnp.pad(lap.astype(cdt), ((0, 0), (0, N_pad - N), (0, N_pad - N)))
    w_p = jnp.pad(weight.astype(cdt), ((0, 0), (0, Fout_pad - Fout)))
    b_p = jnp.pad(bias.astype(jnp.float32),
                  (0, Fout_pad - Fout)).reshape(1, Fout_pad)

    grid = (B, N_pad // TM, N_pad // TK)
    cparams = pltpu.CompilerParams(
        dimension_semantics=("parallel", "parallel", "arbitrary"),
        vmem_limit_bytes=32 * 1024 * 1024,   # safe on v5e/v6e/v7x
    )

    lap_spec = pl.BlockSpec((None, TM, TK), lambda b, i, k: (b, i, k))
    out_spec = pl.BlockSpec((None, TM, Fout_pad), lambda b, i, k: (b, i, 0))
    bias_spec = pl.BlockSpec((1, Fout_pad), lambda b, i, k: (0, 0))

    isz = lambda dt: np.dtype(dt).itemsize
    bytes_io = (lap_p.size * isz(cdt) + x_p.size * isz(cdt)
                + w_p.size * isz(cdt) + b_p.size * 4
                + B * N_pad * Fout_pad * isz(out_dtype))

    if Fin <= Fout:
        # out = (lap @ x) @ W : big matmul contracts against the narrower Fin.
        flops = 2 * B * N_pad * N_pad * Fin + 2 * B * N_pad * Fin * Fout_pad
        out_p = pl.pallas_call(
            _gcn_lap_x_then_w_kernel,
            out_shape=jax.ShapeDtypeStruct((B, N_pad, Fout_pad), out_dtype),
            grid_spec=pltpu.PrefetchScalarGridSpec(
                num_scalar_prefetch=0,
                grid=grid,
                in_specs=[
                    lap_spec,
                    pl.BlockSpec((None, TK, Fin), lambda b, i, k: (b, k, 0)),
                    pl.BlockSpec((Fin, Fout_pad), lambda b, i, k: (0, 0)),
                    bias_spec,
                ],
                out_specs=out_spec,
                scratch_shapes=[pltpu.VMEM((TM, Fin), jnp.float32)],
            ),
            compiler_params=cparams,
            cost_estimate=pl.CostEstimate(
                flops=flops, transcendentals=0, bytes_accessed=bytes_io),
        )(lap_p, x_p, w_p, b_p)
    else:
        # support = x @ W computed once (hoisted), then out = lap @ support.
        support = pl.pallas_call(
            _support_kernel,
            out_shape=jax.ShapeDtypeStruct((B, N_pad, Fout_pad), cdt),
            grid_spec=pltpu.PrefetchScalarGridSpec(
                num_scalar_prefetch=0,
                grid=(B, N_pad // TM),
                in_specs=[
                    pl.BlockSpec((None, TM, Fin), lambda b, i: (b, i, 0)),
                    pl.BlockSpec((Fin, Fout_pad), lambda b, i: (0, 0)),
                ],
                out_specs=pl.BlockSpec((None, TM, Fout_pad),
                                       lambda b, i: (b, i, 0)),
            ),
            compiler_params=pltpu.CompilerParams(
                dimension_semantics=("parallel", "parallel"),
                vmem_limit_bytes=32 * 1024 * 1024,
            ),
        )(x_p, w_p)

        flops = 2 * B * N_pad * Fin * Fout_pad + 2 * B * N_pad * N_pad * Fout_pad
        out_p = pl.pallas_call(
            _gcn_lap_support_kernel,
            out_shape=jax.ShapeDtypeStruct((B, N_pad, Fout_pad), out_dtype),
            grid_spec=pltpu.PrefetchScalarGridSpec(
                num_scalar_prefetch=0,
                grid=grid,
                in_specs=[
                    lap_spec,
                    pl.BlockSpec((None, TK, Fout_pad), lambda b, i, k: (b, k, 0)),
                    bias_spec,
                ],
                out_specs=out_spec,
                scratch_shapes=[pltpu.VMEM((TM, Fout_pad), jnp.float32)],
            ),
            compiler_params=cparams,
            cost_estimate=pl.CostEstimate(
                flops=flops, transcendentals=0, bytes_accessed=bytes_io),
        )(lap_p, support, b_p)

    return out_p[:, :N, :Fout]


def init_params(key, in_features, out_features, dtype=jnp.float32):
    # Xavier uniform (gain=1), matching torch.nn.init.xavier_uniform_
    bound = math.sqrt(6.0 / (in_features + out_features))
    weight = jax.random.uniform(
        key, (in_features, out_features), dtype=dtype, minval=-bound, maxval=bound
    )
    bias = jnp.zeros((out_features,), dtype=dtype)  # init.constant_(bias, 0)
    return weight, bias


# ---------------------------------------------------------------------------
# Demo / correctness check
# ---------------------------------------------------------------------------

if __name__ == "__main__":
    def reference(x, lap, w, b):
        return jnp.einsum("bnm,bmf->bnf", lap,
                          jnp.einsum("bni,io->bno", x, w)) + b

    key = jax.random.PRNGKey(0)

    # Path 1: Fin <= Fout  ->  (lap @ x) @ W kernel.
    B, N, Fin, Fout = 2, 16, 8, 32
    k_w, k_b, k_x, k_a, key = jax.random.split(key, 5)
    weight, _ = init_params(k_w, Fin, Fout)
    bias = 0.1 * jax.random.normal(k_b, (Fout,), dtype=jnp.float32)
    x = jax.random.normal(k_x, (B, N, Fin), dtype=jnp.float32)
    a = jax.random.normal(k_a, (B, N, N), dtype=jnp.float32)
    lap = 0.5 * (a + jnp.swapaxes(a, -1, -2))

    out = jax.block_until_ready(graph_convolution(x, lap, weight, bias))
    ref = reference(x, lap, weight, bias)
    assert out.shape == (B, N, Fout)
    assert jnp.allclose(out, ref, atol=1e-3, rtol=1e-3)

    # Path 2: Fin > Fout  ->  hoisted support kernel + lap @ support kernel.
    B2, N2, Fin2, Fout2 = 2, 20, 64, 24
    k_w2, k_b2, k_x2, k_a2, key = jax.random.split(key, 5)
    w2, _ = init_params(k_w2, Fin2, Fout2)
    b2 = 0.1 * jax.random.normal(k_b2, (Fout2,), dtype=jnp.float32)
    x2 = jax.random.normal(k_x2, (B2, N2, Fin2), dtype=jnp.float32)
    a2 = jax.random.normal(k_a2, (B2, N2, N2), dtype=jnp.float32)
    lap2 = 0.5 * (a2 + jnp.swapaxes(a2, -1, -2))

    out2 = jax.block_until_ready(graph_convolution(x2, lap2, w2, b2))
    ref2 = reference(x2, lap2, w2, b2)
    assert out2.shape == (B2, N2, Fout2)
    assert jnp.allclose(out2, ref2, atol=1e-3, rtol=1e-3)

    # TODO(synk): on v6e/v7x pass compute_dtype=jnp.bfloat16 for ~2x HBM/MXU
    # throughput (accumulation stays f32); kept f32 here for a tight check.
    print("KERNEL_OK")
</pallas_src>

<mosaic_0001>
module attributes {stable_mosaic.version = 11 : i64} {
  func.func @_gcn_lap_x_then_w_kernel(%arg0: i32, %arg1: i32, %arg2: i32, %arg3: memref<1x128x128xf32, #tpu.memory_space<vmem>>, %arg4: memref<1x128x8xf32, #tpu.memory_space<vmem>>, %arg5: memref<8x128xf32, #tpu.memory_space<vmem>>, %arg6: memref<1x128xf32, #tpu.memory_space<vmem>>, %arg7: memref<1x128x128xf32, #tpu.memory_space<vmem>>, %arg8: memref<128x8xf32, #tpu.memory_space<vmem>>) attributes {dimension_semantics = [#tpu.dimension_semantics<parallel>, #tpu.dimension_semantics<parallel>, #tpu.dimension_semantics<arbitrary>], iteration_bounds = array<i64: 2, 1, 1>, scalar_prefetch = 0 : i64, scratch_operands = 1 : i64, tpu.core_type = #tpu.core_type<tc>, window_params = [{transform_indices = @transform_0, window_bounds = array<i64: 1, 128, 128>}, {transform_indices = @transform_1, window_bounds = array<i64: 1, 128, 8>}, {pipeline_mode = #tpu.pipeline_mode<synchronous>, transform_indices = @transform_2, window_bounds = array<i64: 8, 128>}, {pipeline_mode = #tpu.pipeline_mode<synchronous>, transform_indices = @transform_3, window_bounds = array<i64: 1, 128>}, {transform_indices = @transform_4, window_bounds = array<i64: 1, 128, 128>}]} {
    %c0_i32 = arith.constant 0 : i32
    %0 = arith.cmpi eq, %arg2, %c0_i32 : i32
    %1 = arith.extui %0 : i1 to i32
    %c0_i32_0 = arith.constant 0 : i32
    %2 = arith.cmpi ne, %1, %c0_i32_0 : i32
    scf.if %2 {
      %cst_12 = arith.constant 0.000000e+00 : f32
      %14 = vector.broadcast %cst_12 : f32 to vector<128x8xf32>
      %c0_13 = arith.constant 0 : index
      %c0_14 = arith.constant 0 : index
      %15 = vector.load %arg8[%c0_13, %c0_14] : memref<128x8xf32, #tpu.memory_space<vmem>>, vector<128x8xf32>
      tpu.vector_store %arg8[%c0_13, %c0_14], %14 {strides = array<i32>} : memref<128x8xf32, #tpu.memory_space<vmem>>, vector<128x8xf32>,
    } else {
    }
    %c0 = arith.constant 0 : index
    %c0_1 = arith.constant 0 : index
    %3 = vector.load %arg8[%c0, %c0_1] : memref<128x8xf32, #tpu.memory_space<vmem>>, vector<128x8xf32>
    %c0_2 = arith.constant 0 : index
    %c0_3 = arith.constant 0 : index
    %c0_4 = arith.constant 0 : index
    %4 = vector.load %arg3[%c0_2, %c0_3, %c0_4] : memref<1x128x128xf32, #tpu.memory_space<vmem>>, vector<1x128x128xf32>
    %5 = vector.shape_cast %4 : vector<1x128x128xf32> to vector<128x128xf32>
    %c0_5 = arith.constant 0 : index
    %c0_6 = arith.constant 0 : index
    %c0_7 = arith.constant 0 : index
    %6 = vector.load %arg4[%c0_5, %c0_6, %c0_7] : memref<1x128x8xf32, #tpu.memory_space<vmem>>, vector<1x128x8xf32>
    %7 = vector.shape_cast %6 : vector<1x128x8xf32> to vector<128x8xf32>
    %cst = arith.constant dense<0.000000e+00> : vector<128x8xf32>
    %8 = tpu.matmul %5, %7, %cst {dimension_numbers = #tpu.dot_dimension_numbers<[1], [0], [0], [1], [0, 0, 1, 1], [], []>} : vector<128x128xf32>, vector<128x8xf32>, vector<128x8xf32> -> vector<128x8xf32>
    %9 = arith.addf %3, %8 : vector<128x8xf32>
    %c0_8 = arith.constant 0 : index
    %c0_9 = arith.constant 0 : index
    %10 = vector.load %arg8[%c0_8, %c0_9] : memref<128x8xf32, #tpu.memory_space<vmem>>, vector<128x8xf32>
    tpu.vector_store %arg8[%c0_8, %c0_9], %9 {strides = array<i32>} : memref<128x8xf32, #tpu.memory_space<vmem>>, vector<128x8xf32>,
    %c0_i32_10 = arith.constant 0 : i32
    %11 = arith.cmpi eq, %arg2, %c0_i32_10 : i32
    %12 = arith.extui %11 : i1 to i32
    %c0_i32_11 = arith.constant 0 : i32
    %13 = arith.cmpi ne, %12, %c0_i32_11 : i32
    scf.if %13 {
      %c0_12 = arith.constant 0 : index
      %c0_13 = arith.constant 0 : index
      %14 = vector.load %arg8[%c0_12, %c0_13] : memref<128x8xf32, #tpu.memory_space<vmem>>, vector<128x8xf32>
      %c0_14 = arith.constant 0 : index
      %c0_15 = arith.constant 0 : index
      %15 = vector.load %arg5[%c0_14, %c0_15] : memref<8x128xf32, #tpu.memory_space<vmem>>, vector<8x128xf32>
      %cst_16 = arith.constant dense<0.000000e+00> : vector<128x128xf32>
      %16 = tpu.matmul %14, %15, %cst_16 {dimension_numbers = #tpu.dot_dimension_numbers<[1], [0], [0], [1], [0, 0, 1, 1], [], []>} : vector<128x8xf32>, vector<8x128xf32>, vector<128x128xf32> -> vector<128x128xf32>
      %c0_17 = arith.constant 0 : index
      %c0_18 = arith.constant 0 : index
      %17 = vector.load %arg6[%c0_17, %c0_18] : memref<1x128xf32, #tpu.memory_space<vmem>>, vector<1x128xf32>
      %18 = vector.broadcast %17 : vector<1x128xf32> to vector<128x128xf32>
      %19 = arith.addf %16, %18 : vector<128x128xf32>
      %c0_19 = arith.constant 0 : index
      %c0_20 = arith.constant 0 : index
      %c0_21 = arith.constant 0 : index
      %20 = vector.load %arg7[%c0_19, %c0_20, %c0_21] : memref<1x128x128xf32, #tpu.memory_space<vmem>>, vector<1x128x128xf32>
      %21 = vector.shape_cast %20 : vector<1x128x128xf32> to vector<128x128xf32>
      %22 = vector.shape_cast %19 : vector<128x128xf32> to vector<1x128x128xf32>
      tpu.vector_store %arg7[%c0_19, %c0_20, %c0_21], %22 {strides = array<i32>} : memref<1x128x128xf32, #tpu.memory_space<vmem>>, vector<1x128x128xf32>,
    } else {
    }
    return
  }
  func.func @transform_0(%arg0: i32, %arg1: i32, %arg2: i32) -> (i32, i32, i32) {
    %c0_i32 = arith.constant 0 : i32
    return %arg0, %arg1, %arg2 : i32, i32, i32
  }
  func.func @transform_1(%arg0: i32, %arg1: i32, %arg2: i32) -> (i32, i32, i32) {
    %c0_i32 = arith.constant 0 : i32
    %c0_i32_0 = arith.constant 0 : i32
    return %arg0, %arg2, %c0_i32 : i32, i32, i32
  }
  func.func @transform_2(%arg0: i32, %arg1: i32, %arg2: i32) -> (i32, i32) {
    %c0_i32 = arith.constant 0 : i32
    %c0_i32_0 = arith.constant 0 : i32
    %c0_i32_1 = arith.constant 0 : i32
    return %c0_i32, %c0_i32_0 : i32, i32
  }
  func.func @transform_3(%arg0: i32, %arg1: i32, %arg2: i32) -> (i32, i32) {
    %c0_i32 = arith.constant 0 : i32
    %c0_i32_0 = arith.constant 0 : i32
    %c0_i32_1 = arith.constant 0 : i32
    return %c0_i32, %c0_i32_0 : i32, i32
  }
  func.func @transform_4(%arg0: i32, %arg1: i32, %arg2: i32) -> (i32, i32, i32) {
    %c0_i32 = arith.constant 0 : i32
    %c0_i32_0 = arith.constant 0 : i32
    return %arg0, %arg1, %c0_i32 : i32, i32, i32
  }
}

</mosaic_0001>

<bundles_post_ra>
// kernel: tpu_custom_call.1
= control target key start
LH: loop header
LB: loop body
LE: loop exit
PB: predicated region body
PF: predicated region fallthrough
CT: control target
= control target key end

     0   :  { %9 = vsyncpa [#allocation4], 0  ;;  %s1481_s0 = inlined_call_operand.vmem [shape: f32[2,128,128], index: 0, kind: input, shape index: {}]   ;;  %s1482_s1 = inlined_call_operand.vmem [shape: f32[2,128,8], index: 1, kind: input, shape index: {}]   ;;  %s1483_s2 = inlined_call_operand.vmem [shape: f32[8,128], index: 2, kind: input, shape index: {}]   ;;  %s1484_s3 = inlined_call_operand.vmem [shape: f32[1,128], index: 3, kind: input, shape index: {}]   ;;  %s1485_s4 = inlined_call_operand.hbm [shape: f32[2,128,128], index: 4, kind: output, shape index: {}]  }
   0x1   :  { %11 = vsyncpa [#allocation4 + $0x1], 0  ;;  %s1248_s15 = smov 0   ;;  %s1250_s16 = smov 0  }
   0x2   :  { %s1252_s17 = smov 0   ;;  %s1254_s18 = smov 0  }
   0x3   :  { %s1256_s19 = smov 0   ;;  %s1258_s20 = smov 0  }
   0x4 LB: > { %s883_s21 = sadd.s32 4294967295, %s1217_s20   ;;  %s884_s22 = sadd.s32 4294967294, %s1217_s20   ;;  %s1217_s20 = sphi %s1258_s20, %s17_s20   ;;  %s1213_s19 = sphi %s1256_s19, %s1492_s19   ;;  %s1209_s18 = sphi %s1254_s18, %s1491_s18   ;;  %s1205_s17 = sphi %s1252_s17, %s1490_s17   ;;  %s1201_s16 = sphi %s1250_s16, %s1489_s16   ;;  %s1197_s15 = sphi %s1248_s15, %s1488_s15  }
   0x5   : > { %s36_s23 = sadd.s32 1, %s1213_s19  ;;  %s145_s24 = sadd.s32 1, %s1205_s17 }
   0x6   : > { %p38_p0 = scmp.ge.s32.totalorder %s36_s23, 2  ;;  %p155_p1 = scmp.ne.s32.totalorder %s1205_s17, %s1201_s16 }
   0x7   : > { %p156_p2 = scmp.eq.s32.totalorder %s883_s21, 1  ;;  %p161_p3 = scmp.ne.s32.totalorder %s1201_s16, %s1197_s15 }
   0x8   : > { %s1494_s23 = smov (%p38_p0, %s36_s23), 0  ;;  %p162_p5 = scmp.eq.s32.totalorder %s884_s22, 1 }
   0x9   : > { %p1288_p4 = por %p156_p2, %p155_p1  ;;  %s140_s26 = ssub.s32 %s1213_s19, %s1494_s23 }
   0xa   : > { %p887_p6 = scmp.ge.s32.totalorder %s1217_s20, 1  ;;  %p143_p7 = scmp.eq.s32.totalorder %s140_s26, 0 }
   0xb   : > { %p1295_p8 = por %p162_p5, %p161_p3  ;;  %p215_p9 = scmp.lt.s32.totalorder %s1217_s20, 3 }
   0xc   : > { %s1301_s28 = scalar_select %p143_p7, %s1205_s17, %s145_s24  }
   0xd   : > { %p216_p10 = pnand %p887_p6, %p215_p9 }
   0xe   : > { %p258_p11 = scmp.lt.s32.totalorder (!%p216_p10), %s1209_s18, 1  ;;  %vm285_vm0 = vcmask (!%p216_p10), 64512   ;;  %v1219_v0 = vmov (!%p216_p10), 0.0   ;;  %v547_v41 = vld [vmem:[%s1483_s2] sm:$0xff] (!%p216_p10)  ;;  %s254_s13 = sand.u32 (!%p216_p10), 1, %s1201_s16  }
   0xf   : > { %219 = sbr.rel (%p216_p10) target bundleno = 543 (0x21f), region = 36  ;;  %287 = vst.msk [vmem:[#allocation2 + $0x8] sm:$0xff] (!%p216_p10), %vm285_vm0, %v1219_v0  ;;  %286 = vst.msk [vmem:[#allocation2] sm:$0xff] (!%p216_p10), %vm285_vm0, %v1219_v0  ;;  %1023 = vmatprep.subr.mxu1 (!%p216_p10), %v547_v41  ;;  %s888_s14 = sshll.u32 (!%p216_p10), %s254_s13, 7 }
  0x10   : > { %288 = vst.msk [vmem:[#allocation2 + $0x10] sm:$0xff] (!%p216_p10), %vm285_vm0, %v1219_v0  ;;  %289 = vst.msk [vmem:[#allocation2 + $0x18] sm:$0xff] (!%p216_p10), %vm285_vm0, %v1219_v0  ;;  %1024 = vmatpush3.msra.mxu1 (!%p216_p10), %v547_v41  ;;  %s1406_s24 = scalar_lea.vmem (!%p216_p10), [#allocation3], %s888_s14  ;;  %s917_s26 = sshll.u32 (!%p216_p10), %s1209_s18, 11 }
  0x11   : > { %290 = vst.msk [vmem:[#allocation2 + $0x20] sm:$0xff] (!%p216_p10), %vm285_vm0, %v1219_v0  ;;  %291 = vst.msk [vmem:[#allocation2 + $0x28] sm:$0xff] (!%p216_p10), %vm285_vm0, %v1219_v0  ;;  %s1427_s6 = scalar_lea.hbm (!%p216_p10), %s1485_s4, %s917_s26  ;;  %s1220_s8 = smov (!%p216_p10), [#allocation3]  }
  0x12   : > { %292 = vst.msk [vmem:[#allocation2 + $0x30] sm:$0xff] (!%p216_p10), %vm285_vm0, %v1219_v0  ;;  %293 = vst.msk [vmem:[#allocation2 + $0x38] sm:$0xff] (!%p216_p10), %vm285_vm0, %v1219_v0  ;;  %s1143_s9 = sshll.u32 (!%p216_p10), %s1220_s8, 4  ;;  %s1144_s9 = int_to_ptr.vmem [resolvable:$false] %s1143_s9 }
  0x13   : > { %294 = vst.msk [vmem:[#allocation2 + $0x40] sm:$0xff] (!%p216_p10), %vm285_vm0, %v1219_v0  ;;  %295 = vst.msk [vmem:[#allocation2 + $0x48] sm:$0xff] (!%p216_p10), %vm285_vm0, %v1219_v0 }
  0x14   : > { %296 = vst.msk [vmem:[#allocation2 + $0x50] sm:$0xff] (!%p216_p10), %vm285_vm0, %v1219_v0  ;;  %297 = vst.msk [vmem:[#allocation2 + $0x58] sm:$0xff] (!%p216_p10), %vm285_vm0, %v1219_v0 }
  0x15   : > { %298 = vst.msk [vmem:[#allocation2 + $0x60] sm:$0xff] (!%p216_p10), %vm285_vm0, %v1219_v0  ;;  %299 = vst.msk [vmem:[#allocation2 + $0x68] sm:$0xff] (!%p216_p10), %vm285_vm0, %v1219_v0 }
  0x16   : > { %300 = vst.msk [vmem:[#allocation2 + $0x70] sm:$0xff] %vm285_vm0, %v1219_v0  ;;  %301 = vst.msk [vmem:[#allocation2 + $0x78] sm:$0xff] %vm285_vm0, %v1219_v0  ;;  %s259_s29 = scalar_select %p258_p11, %s1209_s18, 1  ;;  %v303_v42 = vld [vmem:[#allocation2 + $0x8] sm:$0xff]  ;;  %v302_v43 = vld [vmem:[#allocation2] sm:$0xff] }
  0x17   : > { %v305_v48 = vld [vmem:[#allocation2 + $0x18] sm:$0xff]  ;;  %v304_v49 = vld [vmem:[#allocation2 + $0x10] sm:$0xff]  ;;  %s1435_s18 = scalar_lea.sflag [#allocation4], %s254_s13 }
  0x18   : > { %s915_s30 = sshll.u32 %s259_s29, 7  ;;  %v307_v54 = vld [vmem:[#allocation2 + $0x28] sm:$0xff]  ;;  %v306_v55 = vld [vmem:[#allocation2 + $0x20] sm:$0xff]  ;;  %s780_s29 = sshll.u32 %s1406_s24, 4  ;;  %s1429_s29 = int_to_ptr.vmem [resolvable:$true] %s780_s29 }
  0x19   : > { %s1326_s7 = scalar_lea.vmem %s1482_s1, %s915_s30  ;;  %s1337_s10 = scalar_lea.vmem %s1481_s0, %s915_s30  ;;  %v309_v60 = vld [vmem:[#allocation2 + $0x38] sm:$0xff]  ;;  %v308_v62 = vld [vmem:[#allocation2 + $0x30] sm:$0xff] }
  0x1a   : > { %v334_v1 = vld [vmem:[%s1326_s7] sm:$0xff]  ;;  %v335_v2 = vld [vmem:[%s1326_s7 + $0x8] sm:$0xff]  ;;  %v336_v3 = vld [vmem:[%s1326_s7 + $0x10] sm:$0xff]  ;;  %p1146_p1 = scmp.lt.s32.totalorder %s1429_s29, %s1144_s9 }
  0x1b   : > { %v1049_v4 = vpack.c.bf16 %v335_v2, %v334_v1  ;;  %v337_v5 = vld [vmem:[%s1326_s7 + $0x18] sm:$0xff]  ;;  %v338_v7 = vld [vmem:[%s1326_s7 + $0x20] sm:$0xff]  ;;  %v339_v8 = vld [vmem:[%s1326_s7 + $0x28] sm:$0xff] }
  0x1c   : > { %v1053_v6 = vpack.c.bf16 %v337_v5, %v336_v3  ;;  %v1057_v9 = vpack.c.bf16 %v339_v8, %v338_v7  ;;  %v318_v10 = vld [vmem:[%s1337_s10] sm:$0xff]  ;;  %v340_v11 = vld [vmem:[%s1326_s7 + $0x30] sm:$0xff]  ;;  %v341_v12 = vld [vmem:[%s1326_s7 + $0x38] sm:$0xff] }
  0x1d   : > { %1050 = vmatprep.subr.bf16.mxu0 %v1049_v4  ;;  %999 = vmatprep.mubr.f32.mxu0 %v318_v10  ;;  %v1061_v13 = vpack.c.bf16 %v341_v12, %v340_v11  ;;  %v342_v14 = vld [vmem:[%s1326_s7 + $0x40] sm:$0xff]  ;;  %v343_v15 = vld [vmem:[%s1326_s7 + $0x48] sm:$0xff]  ;;  %v344_v17 = vld [vmem:[%s1326_s7 + $0x50] sm:$0xff] }
  0x1e   : > { %1052 = vmatpush3.bf16.msra.mxu0 %v1049_v4  ;;  %v1065_v16 = vpack.c.bf16 %v343_v15, %v342_v14  ;;  %v345_v18 = vld [vmem:[%s1326_s7 + $0x58] sm:$0xff]  ;;  %v346_v20 = vld [vmem:[%s1326_s7 + $0x60] sm:$0xff]  ;;  %v347_v21 = vld [vmem:[%s1326_s7 + $0x68] sm:$0xff] }
  0x1f   : > { %1054 = vmatprep.subr.bf16.mxu0 %v1053_v6  ;;  %v1069_v19 = vpack.c.bf16 %v345_v18, %v344_v17  ;;  %v1073_v22 = vpack.c.bf16 %v347_v21, %v346_v20  ;;  %v348_v23 = vld [vmem:[%s1326_s7 + $0x70] sm:$0xff]  ;;  %v349_v24 = vld [vmem:[%s1326_s7 + $0x78] sm:$0xff]  ;;  %v319_v26 = vld [vmem:[%s1337_s10 + $0x8] sm:$0xff]  ;;  %s1139_s7 = scalar_lea.vmem %s1429_s29, 2048 }
  0x20   : > { %v1077_v25 = vpack.c.bf16 %v349_v24, %v348_v23  ;;  %v320_v27 = vld [vmem:[%s1337_s10 + $0x10] sm:$0xff]  ;;  %v321_v28 = vld [vmem:[%s1337_s10 + $0x18] sm:$0xff]  ;;  %v322_v29 = vld [vmem:[%s1337_s10 + $0x20] sm:$0xff]  ;;  %p1140_p12 = scmp.ne.s32.totalorder %s1429_s29, %s1139_s7 }
  0x21   : > { %v323_v30 = vld [vmem:[%s1337_s10 + $0x28] sm:$0xff]  ;;  %v324_v31 = vld [vmem:[%s1337_s10 + $0x30] sm:$0xff]  ;;  %v325_v32 = vld [vmem:[%s1337_s10 + $0x38] sm:$0xff] }
  0x22   : > { %1056 = vmatpush3.bf16.msra.mxu0 %v1053_v6  ;;  %v326_v33 = vld [vmem:[%s1337_s10 + $0x40] sm:$0xff]  ;;  %v327_v34 = vld [vmem:[%s1337_s10 + $0x48] sm:$0xff]  ;;  %v328_v35 = vld [vmem:[%s1337_s10 + $0x50] sm:$0xff]  ;;  %p1141_p13 = pnand %p1140_p12, %p1288_p4 }
  0x23   : > { %1058 = vmatprep.subr.bf16.mxu0 %v1057_v9  ;;  %v329_v36 = vld [vmem:[%s1337_s10 + $0x58] sm:$0xff]  ;;  %v330_v37 = vld [vmem:[%s1337_s10 + $0x60] sm:$0xff]  ;;  %v331_v38 = vld [vmem:[%s1337_s10 + $0x68] sm:$0xff] }
  0x24   : > { %v332_v39 = vld [vmem:[%s1337_s10 + $0x70] sm:$0xff]  ;;  %v333_v40 = vld [vmem:[%s1337_s10 + $0x78] sm:$0xff]  ;;  %v311_v4 = vld [vmem:[#allocation2 + $0x48] sm:$0xff]  ;;  %p1142_p0 = pneg %p1141_p13  ;;  %s1145_s10 = scalar_lea.vmem %s1144_s9, 4096 }
  0x25   : > { %v310_v6 = vld [vmem:[#allocation2 + $0x40] sm:$0xff]  ;;  %v313_v12 = vld [vmem:[#allocation2 + $0x58] sm:$0xff]  ;;  %v312_v14 = vld [vmem:[#allocation2 + $0x50] sm:$0xff]  ;;  %p1147_p2 = scmp.lt.s32.totalorder %s1145_s10, %s1139_s7 }
  0x26   : > { %1060 = vmatpush3.bf16.msra.mxu0 %v1057_v9  ;;  %v315_v20 = vld [vmem:[#allocation2 + $0x68] sm:$0xff] }
  0x27   : > { %1062 = vmatprep.subr.bf16.mxu0 %v1061_v13  ;;  %p1148_p3 = por %p1147_p2, %p1146_p1 }
  0x29   : > { %p1149_p5 = pnand %p1148_p3, %p1142_p0 }
  0x2a   : > { %1064 = vmatpush3.bf16.msra.mxu0 %v1061_v13 }
  0x2b   : > { %1066 = vmatprep.subr.bf16.mxu0 %v1065_v16 }
  0x2e   : > { %1068 = vmatpush3.bf16.msra.mxu0 %v1065_v16 }
  0x2f   : > { %1070 = vmatprep.subr.bf16.mxu0 %v1069_v19 }
  0x32   : > { %1072 = vmatpush3.bf16.msra.mxu0 %v1069_v19 }
  0x33   : > { %1074 = vmatprep.subr.bf16.mxu0 %v1073_v22 }
  0x36   : > { %1076 = vmatpush3.bf16.msra.mxu0 %v1073_v22  ;;  %v314_v22 = vld [vmem:[#allocation2 + $0x60] sm:$0xff] }
  0x37   : > { %1078 = vmatprep.subr.bf16.mxu0 %v1077_v25 }
  0x3a   : > { %1080 = vmatpush3.bf16.msra.mxu0 %v1077_v25 }
  0x3d   : > { %1000 = vmatmul.mubr.f32.vlgmr.msra.gmra.mrb[0].mxu0 %v319_v26 }
  0x3e   : > { %1002 = vmatprep.mubr.f32.mxu0 %v320_v27 }
  0x41   : > { %1003 = vmatmul.mubr.f32.gmra.mrb[2].mxu0 %v321_v28  ;;  %v317_v28 = vld [vmem:[#allocation2 + $0x78] sm:$0xff] }
  0x42   : > { %1005 = vmatprep.mubr.f32.mxu0 %v322_v29 }
  0x45   : > { %1006 = vmatmul.mubr.f32.gmra.mrb[4].mxu0 %v323_v30  ;;  %v316_v30 = vld [vmem:[#allocation2 + $0x70] sm:$0xff] }
  0x46   : > { %1008 = vmatprep.mubr.f32.mxu0 %v324_v31 }
  0x49   : > { %1009 = vmatmul.mubr.f32.gmra.mrb[6].mxu0 %v325_v32 }
  0x4a   : > { %1011 = vmatprep.mubr.f32.mxu0 %v326_v33 }
  0x4d   : > { %1012 = vmatmul.mubr.f32.gmra.mrb[8].mxu0 %v327_v34 }
  0x4e   : > { %1014 = vmatprep.mubr.f32.mxu0 %v328_v35 }
  0x51   : > { %1015 = vmatmul.mubr.f32.gmra.mrb[10].mxu0 %v329_v36 }
  0x52   : > { %1017 = vmatprep.mubr.f32.mxu0 %v330_v37 }
  0x55   : > { %1018 = vmatmul.mubr.f32.gmra.mrb[12].mxu0 %v331_v38 }
  0x56   : > { %1020 = vmatprep.mubr.f32.mxu0 %v332_v39 }
  0x59   : > { %1021 = vmatmul.mubr.f32.gmra.mrb[14].mxu0 %v333_v40 }
 0x110   : > { %v1001_v44 = vpop.f32.mrb[0].mxu0 }
 0x111   : > { %v496_v45 = vadd.f32 %v1001_v44, %v303_v42  ;;  %v416_v46 = vpop.f32.mrb[1].mxu0  ;;  %v893_v42 = vld [vmem:[%s1484_s3] ss:$0 sm:$0xff] }
 0x112   : > { %v495_v47 = vadd.f32 %v416_v46, %v302_v43 }
 0x113   : > { %513 = vst.msk [vmem:[#allocation2 + $0x8] sm:$0xff] %vm285_vm0, %v496_v45 }
 0x114   : > { %512 = vst.msk [vmem:[#allocation2] sm:$0xff] %vm285_vm0, %v495_v47  ;;  %v1004_v50 = vpop.f32.mrb[2].mxu0 }
 0x115   : > { %v498_v51 = vadd.f32 %v1004_v50, %v305_v48  ;;  %v426_v52 = vpop.f32.mrb[3].mxu0 }
 0x116   : > { %v497_v53 = vadd.f32 %v426_v52, %v304_v49 }
 0x117   : > { %515 = vst.msk [vmem:[#allocation2 + $0x18] sm:$0xff] %vm285_vm0, %v498_v51 }
 0x118   : > { %514 = vst.msk [vmem:[#allocation2 + $0x10] sm:$0xff] %vm285_vm0, %v497_v53  ;;  %v1007_v56 = vpop.f32.mrb[4].mxu0 }
 0x119   : > { %v500_v57 = vadd.f32 %v1007_v56, %v307_v54  ;;  %v436_v58 = vpop.f32.mrb[5].mxu0 }
 0x11a   : > { %v499_v59 = vadd.f32 %v436_v58, %v306_v55  ;;  %v532_v0 = vld [vmem:[#allocation2 + $0x8] sm:$0xff] }
 0x11b   : > { %517 = vst.msk [vmem:[#allocation2 + $0x28] sm:$0xff] %vm285_vm0, %v500_v57  ;;  %v531_v61 = vld [vmem:[#allocation2] sm:$0xff] }
 0x11c   : > { %516 = vst.msk [vmem:[#allocation2 + $0x20] sm:$0xff] %vm285_vm0, %v499_v59  ;;  %v1010_v63 = vpop.f32.mrb[6].mxu0  ;;  %1025 = vmatprep.mubr.msk.f32.mxu1 %vm285_vm0, %v531_v61 }
 0x11d   : > { %v502_v1 = vadd.f32 %v1010_v63, %v309_v60  ;;  %v446_v2 = vpop.f32.mrb[7].mxu0  ;;  %1026 = vmatmul.mubr.msk.f32.vlgmr.msra.gmra.mrb[0].mxu1 %vm285_vm0, %v532_v0 }
 0x11e   : > { %v501_v3 = vadd.f32 %v446_v2, %v308_v62  ;;  %v534_v8 = vld [vmem:[#allocation2 + $0x18] sm:$0xff] }
 0x11f   : > { %519 = vst.msk [vmem:[#allocation2 + $0x38] sm:$0xff] %vm285_vm0, %v502_v1  ;;  %v533_v5 = vld [vmem:[#allocation2 + $0x10] sm:$0xff] }
 0x120   : > { %518 = vst.msk [vmem:[#allocation2 + $0x30] sm:$0xff] %vm285_vm0, %v501_v3  ;;  %v1013_v7 = vpop.f32.mrb[8].mxu0  ;;  %1028 = vmatprep.mubr.msk.f32.mxu1 %vm285_vm0, %v533_v5 }
 0x121   : > { %v504_v9 = vadd.f32 %v1013_v7, %v311_v4  ;;  %v456_v10 = vpop.f32.mrb[9].mxu0  ;;  %1029 = vmatmul.mubr.msk.f32.gmra.mrb[2].mxu1 %vm285_vm0, %v534_v8 }
 0x122   : > { %v503_v11 = vadd.f32 %v456_v10, %v310_v6  ;;  %v536_v16 = vld [vmem:[#allocation2 + $0x28] sm:$0xff] }
 0x123   : > { %521 = vst.msk [vmem:[#allocation2 + $0x48] sm:$0xff] %vm285_vm0, %v504_v9  ;;  %v535_v13 = vld [vmem:[#allocation2 + $0x20] sm:$0xff] }
 0x124   : > { %520 = vst.msk [vmem:[#allocation2 + $0x40] sm:$0xff] %vm285_vm0, %v503_v11  ;;  %v1016_v15 = vpop.f32.mrb[10].mxu0  ;;  %1031 = vmatprep.mubr.msk.f32.mxu1 %vm285_vm0, %v535_v13 }
 0x125   : > { %v506_v17 = vadd.f32 %v1016_v15, %v313_v12  ;;  %v466_v18 = vpop.f32.mrb[11].mxu0  ;;  %1032 = vmatmul.mubr.msk.f32.gmra.mrb[4].mxu1 %vm285_vm0, %v536_v16 }
 0x126   : > { %v505_v19 = vadd.f32 %v466_v18, %v312_v14  ;;  %v538_v24 = vld [vmem:[#allocation2 + $0x38] sm:$0xff] }
 0x127   : > { %523 = vst.msk [vmem:[#allocation2 + $0x58] sm:$0xff] %vm285_vm0, %v506_v17  ;;  %v537_v21 = vld [vmem:[#allocation2 + $0x30] sm:$0xff] }
 0x128   : > { %522 = vst.msk [vmem:[#allocation2 + $0x50] sm:$0xff] %vm285_vm0, %v505_v19  ;;  %v1019_v23 = vpop.f32.mrb[12].mxu0  ;;  %1034 = vmatprep.mubr.msk.f32.mxu1 %vm285_vm0, %v537_v21 }
 0x129   : > { %v508_v25 = vadd.f32 %v1019_v23, %v315_v20  ;;  %v476_v26 = vpop.f32.mrb[13].mxu0  ;;  %1035 = vmatmul.mubr.msk.f32.gmra.mrb[6].mxu1 %vm285_vm0, %v538_v24 }
 0x12a   : > { %v507_v27 = vadd.f32 %v476_v26, %v314_v22  ;;  %v540_v32 = vld [vmem:[#allocation2 + $0x48] sm:$0xff] }
 0x12b   : > { %525 = vst.msk [vmem:[#allocation2 + $0x68] sm:$0xff] %vm285_vm0, %v508_v25  ;;  %v539_v29 = vld [vmem:[#allocation2 + $0x40] sm:$0xff] }
 0x12c   : > { %524 = vst.msk [vmem:[#allocation2 + $0x60] sm:$0xff] %vm285_vm0, %v507_v27  ;;  %v1022_v31 = vpop.f32.mrb[14].mxu0  ;;  %1037 = vmatprep.mubr.msk.f32.mxu1 %vm285_vm0, %v539_v29 }
 0x12d   : > { %v510_v33 = vadd.f32 %v1022_v31, %v317_v28  ;;  %v486_v34 = vpop.f32.mrb[15].mxu0  ;;  %1038 = vmatmul.mubr.msk.f32.gmra.mrb[8].mxu1 %vm285_vm0, %v540_v32 }
 0x12e   : > { %v509_v35 = vadd.f32 %v486_v34, %v316_v30  ;;  %v542_v37 = vld [vmem:[#allocation2 + $0x58] sm:$0xff] }
 0x12f   : > { %527 = vst.msk [vmem:[#allocation2 + $0x78] sm:$0xff] %vm285_vm0, %v510_v33  ;;  %v541_v36 = vld [vmem:[#allocation2 + $0x50] sm:$0xff] }
 0x130   : > { %526 = vst.msk [vmem:[#allocation2 + $0x70] sm:$0xff] %vm285_vm0, %v509_v35  ;;  %1040 = vmatprep.mubr.msk.f32.mxu1 %vm285_vm0, %v541_v36 }
 0x131   : > { %1041 = vmatmul.mubr.msk.f32.gmra.mrb[10].mxu1 %vm285_vm0, %v542_v37 }
 0x132   : > { %v544_v39 = vld [vmem:[#allocation2 + $0x68] sm:$0xff] }
 0x133   : > { %v543_v38 = vld [vmem:[#allocation2 + $0x60] sm:$0xff] }
 0x134   : > { %1043 = vmatprep.mubr.msk.f32.mxu1 %vm285_vm0, %v543_v38 }
 0x135   : > { %1044 = vmatmul.mubr.msk.f32.gmra.mrb[12].mxu1 %vm285_vm0, %v544_v39 }
 0x136   : > { %v546_v41 = vld [vmem:[#allocation2 + $0x78] sm:$0xff] }
 0x137   : > { %v545_v40 = vld [vmem:[#allocation2 + $0x70] sm:$0xff] }
 0x138   : > { %1046 = vmatprep.mubr.msk.f32.mxu1 %vm285_vm0, %v545_v40 }
 0x139   : > { %1047 = vmatmul.mubr.msk.f32.gmra.mrb[14].mxu1 %vm285_vm0, %v546_v41 }
 0x1f0   : > { %v1027_v43 = vpop.f32.mrb[0].mxu1 }
 0x1f1   : > { %v675_v44 = vadd.f32 %v1027_v43, %v893_v42  ;;  %v669_v45 = vpop.f32.mrb[1].mxu1 }
 0x1f2   : > { %v670_v46 = vadd.f32 %v893_v42, %v669_v45 }
 0x1f3   : > { %749 = vst [vmem:[%s1406_s24 + $0x8] sm:$0xff] %v675_v44 }
 0x1f4   : > { %748 = vst [vmem:[%s1406_s24] sm:$0xff] %v670_v46  ;;  %v1030_v47 = vpop.f32.mrb[2].mxu1 }
 0x1f5   : > { %v685_v48 = vadd.f32 %v1030_v47, %v893_v42  ;;  %v679_v49 = vpop.f32.mrb[3].mxu1 }
 0x1f6   : > { %v680_v50 = vadd.f32 %v893_v42, %v679_v49 }
 0x1f7   : > { %751 = vst [vmem:[%s1406_s24 + $0x18] sm:$0xff] %v685_v48 }
 0x1f8   : > { %750 = vst [vmem:[%s1406_s24 + $0x10] sm:$0xff] %v680_v50  ;;  %v1033_v51 = vpop.f32.mrb[4].mxu1 }
 0x1f9   : > { %v695_v52 = vadd.f32 %v1033_v51, %v893_v42  ;;  %v689_v53 = vpop.f32.mrb[5].mxu1 }
 0x1fa   : > { %v690_v54 = vadd.f32 %v893_v42, %v689_v53 }
 0x1fb   : > { %753 = vst [vmem:[%s1406_s24 + $0x28] sm:$0xff] %v695_v52 }
 0x1fc   : > { %752 = vst [vmem:[%s1406_s24 + $0x20] sm:$0xff] %v690_v54  ;;  %v1036_v55 = vpop.f32.mrb[6].mxu1 }
 0x1fd   : > { %v705_v56 = vadd.f32 %v1036_v55, %v893_v42  ;;  %v699_v57 = vpop.f32.mrb[7].mxu1 }
 0x1fe   : > { %v700_v58 = vadd.f32 %v893_v42, %v699_v57 }
 0x1ff   : > { %755 = vst [vmem:[%s1406_s24 + $0x38] sm:$0xff] %v705_v56 }
 0x200   : > { %754 = vst [vmem:[%s1406_s24 + $0x30] sm:$0xff] %v700_v58  ;;  %v1039_v59 = vpop.f32.mrb[8].mxu1 }
 0x201   : > { %v715_v60 = vadd.f32 %v1039_v59, %v893_v42  ;;  %v709_v61 = vpop.f32.mrb[9].mxu1 }
 0x202   : > { %v710_v62 = vadd.f32 %v893_v42, %v709_v61 }
 0x203   : > { %757 = vst [vmem:[%s1406_s24 + $0x48] sm:$0xff] %v715_v60 }
 0x204   : > { %756 = vst [vmem:[%s1406_s24 + $0x40] sm:$0xff] %v710_v62  ;;  %v1042_v63 = vpop.f32.mrb[10].mxu1 }
 0x205   : > { %v725_v0 = vadd.f32 %v1042_v63, %v893_v42  ;;  %v719_v1 = vpop.f32.mrb[11].mxu1 }
 0x206   : > { %v720_v2 = vadd.f32 %v893_v42, %v719_v1 }
 0x207   : > { %759 = vst [vmem:[%s1406_s24 + $0x58] sm:$0xff] %v725_v0 }
 0x208   : > { %758 = vst [vmem:[%s1406_s24 + $0x50] sm:$0xff] %v720_v2  ;;  %v1045_v3 = vpop.f32.mrb[12].mxu1 }
 0x209   : > { %v735_v4 = vadd.f32 %v1045_v3, %v893_v42  ;;  %v729_v5 = vpop.f32.mrb[13].mxu1 }
 0x20a   : > { %v730_v6 = vadd.f32 %v893_v42, %v729_v5 }
 0x20b   : > { %761 = vst [vmem:[%s1406_s24 + $0x68] sm:$0xff] %v735_v4 }
 0x20c   : > { %760 = vst [vmem:[%s1406_s24 + $0x60] sm:$0xff] %v730_v6  ;;  %v1048_v7 = vpop.f32.mrb[14].mxu1 }
 0x20d   : > { %v745_v8 = vadd.f32 %v1048_v7, %v893_v42  ;;  %v739_v9 = vpop.f32.mrb[15].mxu1 }
 0x20e   : > { %v740_v10 = vadd.f32 %v893_v42, %v739_v9 }
 0x20f   : > { %763 = vst [vmem:[%s1406_s24 + $0x78] sm:$0xff] %v745_v8 }
 0x210   : > { %762 = vst [vmem:[%s1406_s24 + $0x70] sm:$0xff] %v740_v10 }
 0x211   : > { %1152 = shalt.err (!%p1149_p5)
}
 0x212   : > { %s1153_s11 = scalar_lea.hbm %s1427_s6, 2048  ;;  %s1157_s14 = scalar_lea.hbm %s1485_s4, 4096 }
 0x213   : > { %p1154_p6 = scmp.ne.s32.totalorder %s1427_s6, %s1153_s11  ;;  %p1158_p10 = scmp.lt.u32.totalorder %s1427_s6, %s1485_s4 }
 0x214   : > { %p1159_p11 = scmp.lt.u32.totalorder %s1157_s14, %s1153_s11  ;;  %p1161_p13 = scmp.lt.u32.totalorder %s1153_s11, %s1427_s6 }
 0x215   : > { %p1155_p7 = pnand %p1154_p6, %p1288_p4 }
 0x216   : > { %p1160_p12 = por %p1159_p11, %p1158_p10 }
 0x217   : > { %p1156_p9 = pneg %p1155_p7 }
 0x218   : > { %p1162_p0 = por %p1161_p13, %p1160_p12 }
 0x21a   : > { %p1163_p1 = pnand %p1162_p0, %p1156_p9 }
 0x21c   : > { %1166 = shalt.err (!%p1163_p1)
}
 0x21d   : > { %s1221_s24 = smov 128   ;;  %s1222_s26 = smov 8  }
 0x21e   : > { %1081 = dma.vmem_to_hbm [thread:$0]  (%p1288_p4), %s1429_s29, 2048, %s1427_s6, %s1435_s18, %s1221_s24, %s1221_s24, %s1222_s26  }
 0x21f PF: > { %p1087_p2 = scmp.ge.s32.totalorder %s1217_s20, 2  ;;  %s795_s30 = sand.u32 1, %s1197_s15  }
 0x220   : > { %s796_s5 = scalar_lea.sflag [#allocation4], %s795_s30 }
 0x221   : > { %p1084_p3 = pnand %p1087_p2, %p1295_p8 }
 0x223   : > { %1192 = dma.done.wait (!%p1084_p3), %s796_s5, 2048  }
 0x224   : > { %1194 = vsyncadd (!%p1084_p3), %s796_s5, 4294965248  ;;  %s17_s20 = sadd.s32 1, %s1217_s20   ;;  %s1488_s15 = smov %s1201_s16 }
 0x225   : > { %p14_p5 = scmp.ge.s32.totalorder %s17_s20, 4   ;;  %s1489_s16 = smov %s1205_s17 }
 0x226   : > { %s1490_s17 = smov %s1301_s28  ;;  %s1491_s18 = smov %s1213_s19 }
 0x227   : > { %s1492_s19 = smov %s1494_s23  ;;  %16 = sbr.rel (!%p14_p5) target bundleno = 4 (0x4), region = 82 }
 0x22e   :  { %801 = vsyncpa [#allocation4], 1 }
 0x22f   :  { %803 = vsyncpa [#allocation4 + $0x1], 1 }

</bundles_post_ra>
